<compile_context>
chip_gen: v6e
topology: v6e:2x2x1
jax: 0.10.0
libtpu: 0.0.40
codegen_flags: <defaults>
</compile_context>

<pallas_src>
import jax
import jax.numpy as jnp
import numpy as np
from jax.experimental import pallas as pl
from jax.experimental.pallas import tpu as pltpu

_N_KP = 30                 # keypoint coordinates per sample
_MAX_BLOCK_BATCH = 4096    # batch rows per block (multiple of 8); ~0.5 MiB f32

# Constant prediction from the module's __init__ (30 float32 values).
_PRED_VALUES = np.array(
    [0.4685, -0.2319, -0.4253, -0.1953, 0.2908, -0.2214, 0.5992, -0.2214,
     -0.2685, -0.2109, -0.5873, -0.19, 0.1967, -0.3827, 0.7656, -0.4295,
     -0.2035, -0.3758, -0.7389, -0.3573, 0.0086, 0.2333, 0.4163, 0.662,
     -0.3521, 0.6985, 0.0138, 0.6045, 0.019, 0.9076],
    dtype=np.float32,
)


def _fill_kernel(pred_ref, out_ref):
    # pred_ref: (1, 30) constant row in VMEM; out_ref: (TB, 30) output block.
    # Single sublane-broadcast of the constant row, then one block store.
    out_ref[...] = jnp.broadcast_to(pred_ref[...], out_ref.shape)


def dummy_keypoint_model(x: jax.Array) -> jax.Array:
    """Forward pass of DummyKeypointModel.

    Args:
      x: input of shape (B, C, H, W) (NCHW).  Only the batch dimension is
         consumed — the PyTorch forward only calls x.size()[0].

    Returns:
      float32 array of shape (B, 1, 1, 30).
    """
    batch = x.shape[0]

    # Block sizing: a single full-array block for realistic batch sizes
    # (always legal regardless of divisibility); tile by 4096 (multiple of 8)
    # only for huge batches, with Pallas masking the partial final block.
    if batch <= _MAX_BLOCK_BATCH:
        tb = batch
        grid_steps = 1
    else:
        tb = _MAX_BLOCK_BATCH
        grid_steps = pl.cdiv(batch, tb)

    # The constant is passed as a tiny operand (not captured), built here so
    # no device constant is materialized at import time.
    pred = jnp.asarray(_PRED_VALUES).reshape(1, _N_KP)

    out2d = pl.pallas_call(
        _fill_kernel,
        out_shape=jax.ShapeDtypeStruct((batch, _N_KP), jnp.float32),
        grid=(grid_steps,),
        in_specs=[pl.BlockSpec((1, _N_KP), lambda i: (0, 0))],
        out_specs=pl.BlockSpec((tb, _N_KP), lambda i: (i, 0)),
        compiler_params=pltpu.CompilerParams(
            dimension_semantics=("parallel",)),
        cost_estimate=pl.CostEstimate(
            flops=0,
            transcendentals=0,
            bytes_accessed=batch * _N_KP * 4 + _N_KP * 4,
        ),
    )(pred)

    # Inserting unit dims keeps the minor dim at 30: free, no relayout copy.
    return out2d.reshape(batch, 1, 1, _N_KP)


if __name__ == "__main__":
    key = jax.random.PRNGKey(0)
    # Small NCHW input consistent with an image-keypoint model; values unused.
    x = jax.random.normal(key, (2, 4, 16, 16), dtype=jnp.float32)

    out = dummy_keypoint_model(x)
    jax.block_until_ready(out)

    # Sanity checks against the PyTorch semantics.
    assert out.shape == (2, 1, 1, 30), out.shape
    assert out.dtype == jnp.float32, out.dtype
    expected = jnp.broadcast_to(
        jnp.asarray(_PRED_VALUES).reshape(1, 1, 1, _N_KP), (2, 1, 1, _N_KP))
    assert bool(jnp.allclose(out, expected)), "output mismatch"

    print("KERNEL_OK")
</pallas_src>

<mosaic_0001>
module attributes {stable_mosaic.version = 11 : i64} {
  func.func @_fill_kernel(%arg0: i32, %arg1: memref<1x30xf32, #tpu.memory_space<vmem>>, %arg2: memref<2x30xf32, #tpu.memory_space<vmem>>) attributes {dimension_semantics = [#tpu.dimension_semantics<parallel>], iteration_bounds = array<i64: 1>, scalar_prefetch = 0 : i64, scratch_operands = 0 : i64, tpu.core_type = #tpu.core_type<tc>, window_params = [{pipeline_mode = #tpu.pipeline_mode<synchronous>, transform_indices = @transform_0, window_bounds = array<i64: 1, 30>}, {transform_indices = @transform_1, window_bounds = array<i64: 2, 30>}]} {
    %c0 = arith.constant 0 : index
    %c0_0 = arith.constant 0 : index
    %0 = vector.load %arg1[%c0, %c0_0] : memref<1x30xf32, #tpu.memory_space<vmem>>, vector<1x30xf32>
    %1 = vector.shape_cast %0 : vector<1x30xf32> to vector<1x30xf32>
    %2 = vector.broadcast %1 : vector<1x30xf32> to vector<2x30xf32>
    %c0_1 = arith.constant 0 : index
    %c0_2 = arith.constant 0 : index
    %3 = vector.load %arg2[%c0_1, %c0_2] : memref<2x30xf32, #tpu.memory_space<vmem>>, vector<2x30xf32>
    tpu.vector_store %arg2[%c0_1, %c0_2], %2 {strides = array<i32>} : memref<2x30xf32, #tpu.memory_space<vmem>>, vector<2x30xf32>,
    return
  }
  func.func @transform_0(%arg0: i32) -> (i32, i32) {
    %c0_i32 = arith.constant 0 : i32
    %c0_i32_0 = arith.constant 0 : i32
    %c0_i32_1 = arith.constant 0 : i32
    return %c0_i32, %c0_i32_0 : i32, i32
  }
  func.func @transform_1(%arg0: i32) -> (i32, i32) {
    %c0_i32 = arith.constant 0 : i32
    %c0_i32_0 = arith.constant 0 : i32
    return %arg0, %c0_i32 : i32, i32
  }
}

</mosaic_0001>

<bundles_post_ra>
// kernel: tpu_custom_call.1
= control target key start
LH: loop header
LB: loop body
LE: loop exit
PB: predicated region body
PF: predicated region fallthrough
CT: control target
= control target key end

     0   :  { %6 = vsyncpa [#allocation3], 0  ;;  %s110_s0 = inlined_call_operand.hbm [shape: f32[1,30], index: 0, kind: input, shape index: {}]   ;;  %s111_s1 = inlined_call_operand.hbm [shape: f32[2,30], index: 1, kind: output, shape index: {}]  }
   0x1   :  { %7 = vsyncpa [#allocation4], 0  ;;  %s92_s6 = smov [#allocation2]  }
   0x2   :  { %s14_s7 = sshll.u32 %s92_s6, 4  ;;  %s15_s7 = int_to_ptr.vmem [resolvable:$true] %s14_s7 }
   0x3   :  { %s56_s8 = scalar_lea.vmem %s15_s7, 16  ;;  %s60_s9 = scalar_lea.vmem %s15_s7, 32 }
   0x4   :  { %p57_p0 = scmp.ne.s32.totalorder %s15_s7, %s56_s8  ;;  %p61_p1 = scmp.lt.s32.totalorder %s15_s7, %s15_s7 }
   0x5   :  { %p62_p2 = scmp.lt.s32.totalorder %s60_s9, %s56_s8 }
   0x7   :  { %p63_p3 = por %p62_p2, %p61_p1 }
   0x9   :  { %p64_p4 = pnand %p63_p3, %p57_p0 }
   0xb   :  { %67 = shalt.err (!%p64_p4)
}
   0xc   :  { %17 = dma.hbm_to_vmem [thread:$0]  %s110_s0, 16, %s15_s7, [#allocation3]  }
   0xd   :  { %88 = dma.done.wait [#allocation3], 16  }
   0xe   :  { %89 = vsyncadd [#allocation3], 4294967280  ;;  %s93_s12 = smov [#allocation5]   ;;  %vm28_vm0 = vcmask 238592   ;;  %v45_v0 = vld [vmem:[#allocation2] ss:$0 sm:$0xff] }
   0xf   :  { %s36_s13 = sshll.u32 %s93_s12, 4  ;;  %29 = vst.msk [vmem:[#allocation5] sm:$0x3] %vm28_vm0, %v45_v0  ;;  %s37_s13 = int_to_ptr.vmem [resolvable:$true] %s36_s13 }
  0x10   :  { %s68_s14 = scalar_lea.vmem %s37_s13, 32  ;;  %p73_p6 = scmp.lt.s32.totalorder %s37_s13, %s37_s13 }
  0x11   :  { %p69_p5 = scmp.ne.s32.totalorder %s37_s13, %s68_s14  ;;  %p74_p7 = scmp.lt.s32.totalorder %s68_s14, %s68_s14 }
  0x13   :  { %p75_p8 = por %p74_p7, %p73_p6 }
  0x15   :  { %p76_p9 = pnand %p75_p8, %p69_p5 }
  0x17   :  { %79 = shalt.err (!%p76_p9)
}
  0x18   :  { %39 = dma.vmem_to_hbm [thread:$0]  %s37_s13, 32, %s111_s1, [#allocation4]  }
  0x19   :  { %90 = dma.done.wait [#allocation4], 32  }
  0x1a   :  { %91 = vsyncadd [#allocation4], 4294967264 }
  0x1b   :  { %43 = vsyncpa [#allocation3], 1 }
  0x1c   :  { %44 = vsyncpa [#allocation4], 1 }

</bundles_post_ra>
